<compile_context>
chip_gen: v6e
topology: v6e:2x2x1
jax: 0.10.0
libtpu: 0.0.40
codegen_flags: <defaults>
</compile_context>

<pallas_src>
import functools

import numpy as np
import jax
import jax.numpy as jnp
from jax.experimental import pallas as pl
from jax.experimental.pallas import tpu as pltpu

EPS = 1e-5  # nn.LayerNorm default


def _layernorm_f32(x, gamma, beta):
    # x: (T, E) f32, gamma/beta: (1, E) f32; biased variance (PyTorch LayerNorm).
    mu = jnp.mean(x, axis=-1, keepdims=True)
    var = jnp.mean((x - mu) ** 2, axis=-1, keepdims=True)
    return (x - mu) * jax.lax.rsqrt(var + EPS) * gamma + beta


def _gelu_exact(x):
    # PyTorch nn.GELU default (erf form).
    return 0.5 * x * (1.0 + jax.lax.erf(x * (1.0 / np.sqrt(2.0))))


def gpt_block_kernel(
    x_ref,                      # (1, S, E)   full-S rows of this batch element
    wq_ref, bq_ref,             # (E, E), (1, E)
    wkv_ref, bkv_ref,           # (E, 2E), (1, 2E)
    wo_ref, bo_ref,             # (E, E), (1, E)
    g1_ref, be1_ref,            # (1, E), (1, E)
    w1_ref, b1_ref,             # (E, F), (1, F)
    w2_ref, b2_ref,             # (F, E), (1, E)
    g2_ref, be2_ref,            # (1, E), (1, E)
    o_ref,                      # (1, TS, E)  query-row tile of the output
    k_scr, v_scr,               # (S, E) VMEM scratch: cached K / V per batch elem
    *, num_heads, head_dim, seq_tile,
):
    S = x_ref.shape[1]
    E = num_heads * head_dim
    TS = seq_tile
    cdt = x_ref.dtype  # MXU operand dtype == native input dtype (bf16 or f32)

    row0 = pl.multiple_of(pl.program_id(1) * TS, TS)
    x_q = x_ref[0, pl.ds(row0, TS), :]             # (TS, E) query rows of this tile

    # Hoisted bias / affine rows (read + broadcast once, f32 epilogues).
    bq = bq_ref[...].astype(jnp.float32)
    bo = bo_ref[...].astype(jnp.float32)
    b1 = b1_ref[...].astype(jnp.float32)
    b2 = b2_ref[...].astype(jnp.float32)
    g1 = g1_ref[...].astype(jnp.float32)
    be1 = be1_ref[...].astype(jnp.float32)
    g2 = g2_ref[...].astype(jnp.float32)
    be2 = be2_ref[...].astype(jnp.float32)

    scale = 1.0 / np.sqrt(float(head_dim))

    # --- K / V projection: once per batch element, cached in VMEM scratch ----
    @pl.when(pl.program_id(1) == 0)
    def _():
        bkv = bkv_ref[...].astype(jnp.float32)
        kv = jnp.dot(x_ref[0], wkv_ref[...],
                     preferred_element_type=jnp.float32) + bkv   # (S, 2E)
        k_scr[...] = kv[:, :E].astype(cdt)   # aligned E-wide slice
        v_scr[...] = kv[:, E:].astype(cdt)   # aligned E-wide slice

    # --- Q projection for this tile's query rows -----------------------------
    q = jnp.dot(x_q, wq_ref[...], preferred_element_type=jnp.float32) + bq
    # Fold the 1/sqrt(d) scale into q (TS*d elements, not TS*S).
    q = (q * scale).astype(cdt).reshape(TS, num_heads, head_dim)
    k = k_scr[...].reshape(S, num_heads, head_dim)
    v = v_scr[...].reshape(S, num_heads, head_dim)

    # --- attention: all heads batched into single dot_generals ---------------
    scores = jnp.einsum('qhd,khd->hqk', q, k,
                        preferred_element_type=jnp.float32)      # (H, TS, S)
    m = jnp.max(scores, axis=-1, keepdims=True)
    p = jnp.exp(scores - m)
    l = jnp.sum(p, axis=-1, keepdims=True)
    p = p * pl.reciprocal(l, approx=True)                        # softmax over keys

    ctx = jnp.einsum('hqk,khd->qhd', p.astype(cdt), v,
                     preferred_element_type=jnp.float32).reshape(TS, E)
    attn = jnp.dot(ctx.astype(cdt), wo_ref[...],
                   preferred_element_type=jnp.float32) + bo      # (TS, E)

    # --- residual + LayerNorm 1 (dropout = identity, eval mode) --------------
    h1 = _layernorm_f32(x_q.astype(jnp.float32) + attn, g1, be1)

    # --- feed-forward ---------------------------------------------------------
    f = jnp.dot(h1.astype(cdt), w1_ref[...], preferred_element_type=jnp.float32) + b1
    f = _gelu_exact(f)
    f = jnp.dot(f.astype(cdt), w2_ref[...], preferred_element_type=jnp.float32) + b2

    # --- second "residual" (ff_out + dropout(ff_out) == 2*ff_out) + LN2 ------
    y = _layernorm_f32(f + f, g2, be2)

    o_ref[0] = y.astype(o_ref.dtype)


def _pack_qkv(wqkv, bqkv, num_heads):
    """Re-order packed QKV columns from PyTorch's per-head-interleaved layout
    ([q_h | k_h | v_h] blocks of width 3*d) to [Q_all | K_all | V_all]
    (head-major within each part), so in-kernel slices are lane-aligned."""
    E3 = wqkv.shape[1]
    E = E3 // 3
    d = E // num_heads
    h = np.arange(num_heads)[:, None]
    j = np.arange(d)[None, :]
    perm = np.concatenate([(h * 3 * d + part * d + j).reshape(-1)
                           for part in range(3)])
    w = wqkv[:, perm]
    b = bqkv[:, perm]
    return w[:, :E], b[:, :E], w[:, E:], b[:, E:]


def gpt_block(x, params, *, num_heads, seq_tile=256):
    B, S, E = x.shape
    head_dim = E // num_heads
    F = params["w1"].shape[1]

    ts = min(seq_tile, S)
    if S % ts != 0:
        ts = S                      # fall back to a single query tile
    n_s = S // ts

    wq, bq, wkv, bkv = _pack_qkv(params["wqkv"], params["bqkv"], num_heads)

    kernel = functools.partial(gpt_block_kernel, num_heads=num_heads,
                               head_dim=head_dim, seq_tile=ts)

    full2d = lambda shape: pl.BlockSpec(shape, lambda b, s: (0, 0))

    # Advisory cost estimate (matmuls + transcendentals + HBM traffic).
    mm_flops = (2 * S * E * E                  # Q projection (over all tiles)
                + 2 * S * 2 * E * E            # K/V projection (cached: once)
                + 2 * 2 * S * S * E            # scores + p@v
                + 2 * S * E * E                # out projection
                + 2 * 2 * S * E * F)           # FFN
    weight_bytes = sum(int(p.size) * p.dtype.itemsize for p in params.values())
    cost = pl.CostEstimate(
        flops=int(B * mm_flops),
        transcendentals=int(B * (num_heads * S * S + S * F)),
        bytes_accessed=int(2 * x.size * x.dtype.itemsize + weight_bytes),
    )

    # Rough VMEM budget: double-buffered blocks + K/V scratch + f32
    # intermediates, clamped to a value that is safe on v5e/v6e/v7x.
    blk_bytes = x.dtype.itemsize * S * E + weight_bytes
    scratch_bytes = 2 * S * E * x.dtype.itemsize
    interm_bytes = 4 * (S * 2 * E + 4 * ts * E + 2 * num_heads * ts * S + 2 * ts * F)
    vmem_budget = int(min(max(2 * blk_bytes + scratch_bytes + interm_bytes,
                              32 * 1024 * 1024),
                          64 * 1024 * 1024))
    # TODO(synk): at production sizes, single-buffer the constant weight inputs
    # (pl.Buffered(1) / manual copy) to halve their VMEM footprint on v7x.

    # K/V scratch is filled at the first seq tile and reused by later tiles,
    # so the seq axis must stay on one core ("arbitrary") when tiled.
    dim_sem = ("parallel", "parallel") if n_s == 1 else ("parallel", "arbitrary")

    return pl.pallas_call(
        kernel,
        out_shape=jax.ShapeDtypeStruct((B, S, E), x.dtype),
        grid_spec=pltpu.PrefetchScalarGridSpec(
            num_scalar_prefetch=0,
            grid=(B, n_s),
            in_specs=[
                # x: full sequence resident across query tiles (needed for K/V)
                pl.BlockSpec((1, S, E), lambda b, s: (b, 0, 0)),
                full2d((E, E)), full2d((1, E)),            # wq, bq
                full2d((E, 2 * E)), full2d((1, 2 * E)),    # wkv, bkv
                full2d((E, E)), full2d((1, E)),            # wo, bo
                full2d((1, E)), full2d((1, E)),            # g1, be1
                full2d((E, F)), full2d((1, F)),            # w1, b1
                full2d((F, E)), full2d((1, E)),            # w2, b2
                full2d((1, E)), full2d((1, E)),            # g2, be2
            ],
            out_specs=pl.BlockSpec((1, ts, E), lambda b, s: (b, s, 0)),
            scratch_shapes=[pltpu.VMEM((S, E), x.dtype),   # K cache
                            pltpu.VMEM((S, E), x.dtype)],  # V cache
        ),
        compiler_params=pltpu.CompilerParams(
            dimension_semantics=dim_sem,
            vmem_limit_bytes=vmem_budget),
        cost_estimate=cost,
    )(x, wq, bq, wkv, bkv, params["wo"], params["bo"],
      params["g1"], params["be1"], params["w1"], params["b1"],
      params["w2"], params["b2"], params["g2"], params["be2"])


def gpt_block_ref(x, params, *, num_heads):
    """Pure-JAX reference mirroring the PyTorch forward (eval mode),
    using the original per-head-interleaved QKV packing."""
    B, S, E = x.shape
    d = E // num_heads
    qkv = x @ params["wqkv"] + params["bqkv"][0]                  # (B,S,3E)
    qkv = qkv.reshape(B, S, num_heads, 3 * d)
    q, k, v = qkv[..., :d], qkv[..., d:2 * d], qkv[..., 2 * d:]
    attn = jnp.einsum("bqnd,bknd->bnqk", q, k) / jnp.sqrt(jnp.float32(d))
    attn = jax.nn.softmax(attn, axis=-1)
    out = jnp.einsum("bnqk,bknd->bqnd", attn, v).reshape(B, S, E)
    out = out @ params["wo"] + params["bo"][0]

    def ln(z, g, b):
        mu = jnp.mean(z, -1, keepdims=True)
        var = jnp.mean((z - mu) ** 2, -1, keepdims=True)
        return (z - mu) / jnp.sqrt(var + EPS) * g[0] + b[0]

    h1 = ln(x + out, params["g1"], params["be1"])
    f = h1 @ params["w1"] + params["b1"][0]
    f = 0.5 * f * (1.0 + jax.lax.erf(f / jnp.sqrt(2.0)))
    f = f @ params["w2"] + params["b2"][0]
    return ln(f + f, params["g2"], params["be2"])


if __name__ == "__main__":
    B, S, E = 2, 8, 32
    num_heads, ff_ratio = 4, 4
    F = ff_ratio * E

    key = jax.random.PRNGKey(0)
    ks = jax.random.split(key, 16)
    nrm = lambda k, shape, s=0.02: (s * jax.random.normal(k, shape)).astype(jnp.float32)

    params = {
        "wqkv": nrm(ks[0], (E, 3 * E), 0.05),
        "bqkv": nrm(ks[1], (1, 3 * E)),
        "wo":   nrm(ks[2], (E, E), 0.05),
        "bo":   nrm(ks[3], (1, E)),
        "g1":   1.0 + nrm(ks[4], (1, E)),
        "be1":  nrm(ks[5], (1, E)),
        "w1":   nrm(ks[6], (E, F), 0.05),
        "b1":   nrm(ks[7], (1, F)),
        "w2":   nrm(ks[8], (F, E), 0.05),
        "b2":   nrm(ks[9], (1, E)),
        "g2":   1.0 + nrm(ks[10], (1, E)),
        "be2":  nrm(ks[11], (1, E)),
    }
    x = jax.random.normal(ks[12], (B, S, E), dtype=jnp.float32)

    out = gpt_block(x, params, num_heads=num_heads)
    out = jax.block_until_ready(out)

    ref = gpt_block_ref(x, params, num_heads=num_heads)
    assert out.shape == (B, S, E)
    assert jnp.allclose(out, ref, rtol=2e-3, atol=2e-3), \
        f"max abs err {jnp.max(jnp.abs(out - ref))}"

    print("KERNEL_OK")
</pallas_src>

<mosaic_0001>
module attributes {stable_mosaic.version = 11 : i64} {
  func.func @gpt_block_kernel(%arg0: i32, %arg1: i32, %arg2: memref<1x8x32xf32, #tpu.memory_space<vmem>>, %arg3: memref<32x32xf32, #tpu.memory_space<vmem>>, %arg4: memref<1x32xf32, #tpu.memory_space<vmem>>, %arg5: memref<32x64xf32, #tpu.memory_space<vmem>>, %arg6: memref<1x64xf32, #tpu.memory_space<vmem>>, %arg7: memref<32x32xf32, #tpu.memory_space<vmem>>, %arg8: memref<1x32xf32, #tpu.memory_space<vmem>>, %arg9: memref<1x32xf32, #tpu.memory_space<vmem>>, %arg10: memref<1x32xf32, #tpu.memory_space<vmem>>, %arg11: memref<32x128xf32, #tpu.memory_space<vmem>>, %arg12: memref<1x128xf32, #tpu.memory_space<vmem>>, %arg13: memref<128x32xf32, #tpu.memory_space<vmem>>, %arg14: memref<1x32xf32, #tpu.memory_space<vmem>>, %arg15: memref<1x32xf32, #tpu.memory_space<vmem>>, %arg16: memref<1x32xf32, #tpu.memory_space<vmem>>, %arg17: memref<1x8x32xf32, #tpu.memory_space<vmem>>, %arg18: memref<8x32xf32, #tpu.memory_space<vmem>>, %arg19: memref<8x32xf32, #tpu.memory_space<vmem>>) attributes {dimension_semantics = [#tpu.dimension_semantics<parallel>, #tpu.dimension_semantics<parallel>], iteration_bounds = array<i64: 2, 1>, scalar_prefetch = 0 : i64, scratch_operands = 2 : i64, tpu.core_type = #tpu.core_type<tc>, window_params = [{transform_indices = @transform_0, window_bounds = array<i64: 1, 8, 32>}, {pipeline_mode = #tpu.pipeline_mode<synchronous>, transform_indices = @transform_1, window_bounds = array<i64: 32, 32>}, {pipeline_mode = #tpu.pipeline_mode<synchronous>, transform_indices = @transform_2, window_bounds = array<i64: 1, 32>}, {pipeline_mode = #tpu.pipeline_mode<synchronous>, transform_indices = @transform_3, window_bounds = array<i64: 32, 64>}, {pipeline_mode = #tpu.pipeline_mode<synchronous>, transform_indices = @transform_4, window_bounds = array<i64: 1, 64>}, {pipeline_mode = #tpu.pipeline_mode<synchronous>, transform_indices = @transform_5, window_bounds = array<i64: 32, 32>}, {pipeline_mode = #tpu.pipeline_mode<synchronous>, transform_indices = @transform_6, window_bounds = array<i64: 1, 32>}, {pipeline_mode = #tpu.pipeline_mode<synchronous>, transform_indices = @transform_7, window_bounds = array<i64: 1, 32>}, {pipeline_mode = #tpu.pipeline_mode<synchronous>, transform_indices = @transform_8, window_bounds = array<i64: 1, 32>}, {pipeline_mode = #tpu.pipeline_mode<synchronous>, transform_indices = @transform_9, window_bounds = array<i64: 32, 128>}, {pipeline_mode = #tpu.pipeline_mode<synchronous>, transform_indices = @transform_10, window_bounds = array<i64: 1, 128>}, {pipeline_mode = #tpu.pipeline_mode<synchronous>, transform_indices = @transform_11, window_bounds = array<i64: 128, 32>}, {pipeline_mode = #tpu.pipeline_mode<synchronous>, transform_indices = @transform_12, window_bounds = array<i64: 1, 32>}, {pipeline_mode = #tpu.pipeline_mode<synchronous>, transform_indices = @transform_13, window_bounds = array<i64: 1, 32>}, {pipeline_mode = #tpu.pipeline_mode<synchronous>, transform_indices = @transform_14, window_bounds = array<i64: 1, 32>}, {transform_indices = @transform_15, window_bounds = array<i64: 1, 8, 32>}]} {
    %c8_i32 = arith.constant 8 : i32
    %0 = arith.muli %arg1, %c8_i32 : i32
    %1 = tpu.assume_multiple %0, 8 : i32
    %c0 = arith.constant 0 : index
    %2 = arith.index_cast %1 : i32 to index
    %c0_0 = arith.constant 0 : index
    %3 = vector.load %arg2[%c0, %2, %c0_0] : memref<1x8x32xf32, #tpu.memory_space<vmem>>, vector<1x8x32xf32>
    %4 = vector.shape_cast %3 : vector<1x8x32xf32> to vector<8x32xf32>
    %c0_1 = arith.constant 0 : index
    %c0_2 = arith.constant 0 : index
    %5 = vector.load %arg4[%c0_1, %c0_2] : memref<1x32xf32, #tpu.memory_space<vmem>>, vector<1x32xf32>
    %c0_3 = arith.constant 0 : index
    %c0_4 = arith.constant 0 : index
    %6 = vector.load %arg8[%c0_3, %c0_4] : memref<1x32xf32, #tpu.memory_space<vmem>>, vector<1x32xf32>
    %c0_5 = arith.constant 0 : index
    %c0_6 = arith.constant 0 : index
    %7 = vector.load %arg12[%c0_5, %c0_6] : memref<1x128xf32, #tpu.memory_space<vmem>>, vector<1x128xf32>
    %c0_7 = arith.constant 0 : index
    %c0_8 = arith.constant 0 : index
    %8 = vector.load %arg14[%c0_7, %c0_8] : memref<1x32xf32, #tpu.memory_space<vmem>>, vector<1x32xf32>
    %c0_9 = arith.constant 0 : index
    %c0_10 = arith.constant 0 : index
    %9 = vector.load %arg9[%c0_9, %c0_10] : memref<1x32xf32, #tpu.memory_space<vmem>>, vector<1x32xf32>
    %c0_11 = arith.constant 0 : index
    %c0_12 = arith.constant 0 : index
    %10 = vector.load %arg10[%c0_11, %c0_12] : memref<1x32xf32, #tpu.memory_space<vmem>>, vector<1x32xf32>
    %c0_13 = arith.constant 0 : index
    %c0_14 = arith.constant 0 : index
    %11 = vector.load %arg15[%c0_13, %c0_14] : memref<1x32xf32, #tpu.memory_space<vmem>>, vector<1x32xf32>
    %c0_15 = arith.constant 0 : index
    %c0_16 = arith.constant 0 : index
    %12 = vector.load %arg16[%c0_15, %c0_16] : memref<1x32xf32, #tpu.memory_space<vmem>>, vector<1x32xf32>
    %c0_i32 = arith.constant 0 : i32
    %13 = arith.cmpi eq, %arg1, %c0_i32 : i32
    %14 = arith.extui %13 : i1 to i32
    %c0_i32_17 = arith.constant 0 : i32
    %15 = arith.cmpi ne, %14, %c0_i32_17 : i32
    scf.if %15 {
      %c0_54 = arith.constant 0 : index
      %c0_55 = arith.constant 0 : index
      %110 = vector.load %arg6[%c0_54, %c0_55] : memref<1x64xf32, #tpu.memory_space<vmem>>, vector<1x64xf32>
      %c0_56 = arith.constant 0 : index
      %c0_57 = arith.constant 0 : index
      %c0_58 = arith.constant 0 : index
      %111 = vector.load %arg2[%c0_56, %c0_57, %c0_58] : memref<1x8x32xf32, #tpu.memory_space<vmem>>, vector<1x8x32xf32>
      %112 = vector.shape_cast %111 : vector<1x8x32xf32> to vector<8x32xf32>
      %c0_59 = arith.constant 0 : index
      %c0_60 = arith.constant 0 : index
      %113 = vector.load %arg5[%c0_59, %c0_60] : memref<32x64xf32, #tpu.memory_space<vmem>>, vector<32x64xf32>
      %cst_61 = arith.constant dense<0.000000e+00> : vector<8x64xf32>
      %114 = tpu.matmul %112, %113, %cst_61 {dimension_numbers = #tpu.dot_dimension_numbers<[1], [0], [0], [1], [0, 0, 1, 1], [], []>} : vector<8x32xf32>, vector<32x64xf32>, vector<8x64xf32> -> vector<8x64xf32>
      %115 = vector.broadcast %110 : vector<1x64xf32> to vector<8x64xf32>
      %116 = arith.addf %114, %115 : vector<8x64xf32>
      %117 = vector.extract_strided_slice %116 {offsets = [0, 0], sizes = [8, 32], strides = [1, 1]} : vector<8x64xf32> to vector<8x32xf32>
      %c0_62 = arith.constant 0 : index
      %c0_63 = arith.constant 0 : index
      %118 = vector.load %arg18[%c0_62, %c0_63] : memref<8x32xf32, #tpu.memory_space<vmem>>, vector<8x32xf32>
      tpu.vector_store %arg18[%c0_62, %c0_63], %117 {strides = array<i32>} : memref<8x32xf32, #tpu.memory_space<vmem>>, vector<8x32xf32>,
      %119 = vector.extract_strided_slice %116 {offsets = [0, 32], sizes = [8, 32], strides = [1, 1]} : vector<8x64xf32> to vector<8x32xf32>
      %c0_64 = arith.constant 0 : index
      %c0_65 = arith.constant 0 : index
      %120 = vector.load %arg19[%c0_64, %c0_65] : memref<8x32xf32, #tpu.memory_space<vmem>>, vector<8x32xf32>
      tpu.vector_store %arg19[%c0_64, %c0_65], %119 {strides = array<i32>} : memref<8x32xf32, #tpu.memory_space<vmem>>, vector<8x32xf32>,
    } else {
    }
    %c0_18 = arith.constant 0 : index
    %c0_19 = arith.constant 0 : index
    %16 = vector.load %arg3[%c0_18, %c0_19] : memref<32x32xf32, #tpu.memory_space<vmem>>, vector<32x32xf32>
    %cst = arith.constant dense<0.000000e+00> : vector<8x32xf32>
    %17 = tpu.matmul %4, %16, %cst {dimension_numbers = #tpu.dot_dimension_numbers<[1], [0], [0], [1], [0, 0, 1, 1], [], []>} : vector<8x32xf32>, vector<32x32xf32>, vector<8x32xf32> -> vector<8x32xf32>
    %18 = vector.broadcast %5 : vector<1x32xf32> to vector<8x32xf32>
    %19 = arith.addf %17, %18 : vector<8x32xf32>
    %cst_20 = arith.constant 0.353553385 : f32
    %20 = vector.broadcast %cst_20 : f32 to vector<8x32xf32>
    %21 = arith.mulf %19, %20 : vector<8x32xf32>
    %22 = vector.shape_cast %21 : vector<8x32xf32> to vector<8x4x8xf32>
    %c0_21 = arith.constant 0 : index
    %c0_22 = arith.constant 0 : index
    %23 = vector.load %arg18[%c0_21, %c0_22] : memref<8x32xf32, #tpu.memory_space<vmem>>, vector<8x32xf32>
    %24 = vector.shape_cast %23 : vector<8x32xf32> to vector<8x4x8xf32>
    %c0_23 = arith.constant 0 : index
    %c0_24 = arith.constant 0 : index
    %25 = vector.load %arg19[%c0_23, %c0_24] : memref<8x32xf32, #tpu.memory_space<vmem>>, vector<8x32xf32>
    %26 = vector.shape_cast %25 : vector<8x32xf32> to vector<8x4x8xf32>
    "tpu.trace_start"() <{level = 10 : i32, message = "qhd,khd->hqk"}> : () -> ()
    %cst_25 = arith.constant dense<0.000000e+00> : vector<4x8x8xf32>
    %27 = tpu.matmul %22, %24, %cst_25 {dimension_numbers = #tpu.dot_dimension_numbers<[2], [2], [0], [0], [0, 1, 0, 0, 1, 0], [1], [1]>} : vector<8x4x8xf32>, vector<8x4x8xf32>, vector<4x8x8xf32> -> vector<4x8x8xf32>
    "tpu.trace_stop"() : () -> ()
    %cst_26 = arith.constant dense<0xFF800000> : vector<4x8xf32>
    %28 = vector.multi_reduction <maximumf>, %27, %cst_26 [2] : vector<4x8x8xf32> to vector<4x8xf32>
    %29 = vector.shape_cast %28 : vector<4x8xf32> to vector<4x8x1xf32>
    %30 = vector.broadcast %29 : vector<4x8x1xf32> to vector<4x8x8xf32>
    %31 = arith.subf %27, %30 : vector<4x8x8xf32>
    %32 = math.exp %31 : vector<4x8x8xf32>
    %cst_27 = arith.constant dense<0.000000e+00> : vector<4x8xf32>
    %33 = vector.multi_reduction <add>, %32, %cst_27 [2] : vector<4x8x8xf32> to vector<4x8xf32>
    %34 = vector.shape_cast %33 : vector<4x8xf32> to vector<4x8x1xf32>
    %35 = tpu.reciprocal %34 {approx = true} : vector<4x8x1xf32> -> vector<4x8x1xf32>
    %36 = vector.broadcast %35 : vector<4x8x1xf32> to vector<4x8x8xf32>
    %37 = arith.mulf %32, %36 : vector<4x8x8xf32>
    "tpu.trace_start"() <{level = 10 : i32, message = "hqk,khd->qhd"}> : () -> ()
    %cst_28 = arith.constant dense<0.000000e+00> : vector<4x8x8xf32>
    %38 = tpu.matmul %26, %37, %cst_28 {dimension_numbers = #tpu.dot_dimension_numbers<[0], [2], [2], [1], [0, 1, 0, 2, 1, 1], [1], [0]>} : vector<8x4x8xf32>, vector<4x8x8xf32>, vector<4x8x8xf32> -> vector<4x8x8xf32>
    %39 = tpu.transpose %38, [2, 0, 1] : vector<4x8x8xf32> -> vector<8x4x8xf32>
    "tpu.trace_stop"() : () -> ()
    %40 = vector.shape_cast %39 : vector<8x4x8xf32> to vector<8x32xf32>
    %c0_29 = arith.constant 0 : index
    %c0_30 = arith.constant 0 : index
    %41 = vector.load %arg7[%c0_29, %c0_30] : memref<32x32xf32, #tpu.memory_space<vmem>>, vector<32x32xf32>
    %cst_31 = arith.constant dense<0.000000e+00> : vector<8x32xf32>
    %42 = tpu.matmul %40, %41, %cst_31 {dimension_numbers = #tpu.dot_dimension_numbers<[1], [0], [0], [1], [0, 0, 1, 1], [], []>} : vector<8x32xf32>, vector<32x32xf32>, vector<8x32xf32> -> vector<8x32xf32>
    %43 = vector.broadcast %6 : vector<1x32xf32> to vector<8x32xf32>
    %44 = arith.addf %42, %43 : vector<8x32xf32>
    %45 = arith.addf %4, %44 : vector<8x32xf32>
    %cst_32 = arith.constant dense<0.000000e+00> : vector<8xf32>
    %46 = vector.multi_reduction <add>, %45, %cst_32 [1] : vector<8x32xf32> to vector<8xf32>
    %47 = vector.shape_cast %46 : vector<8xf32> to vector<8x1xf32>
    %cst_33 = arith.constant 3.200000e+01 : f32
    %48 = vector.broadcast %cst_33 : f32 to vector<8x1xf32>
    %49 = arith.divf %47, %48 : vector<8x1xf32>
    %50 = vector.broadcast %49 : vector<8x1xf32> to vector<8x32xf32>
    %51 = arith.subf %45, %50 : vector<8x32xf32>
    %52 = arith.mulf %51, %51 : vector<8x32xf32>
    %cst_34 = arith.constant dense<0.000000e+00> : vector<8xf32>
    %53 = vector.multi_reduction <add>, %52, %cst_34 [1] : vector<8x32xf32> to vector<8xf32>
    %54 = vector.shape_cast %53 : vector<8xf32> to vector<8x1xf32>
    %cst_35 = arith.constant 3.200000e+01 : f32
    %55 = vector.broadcast %cst_35 : f32 to vector<8x1xf32>
    %56 = arith.divf %54, %55 : vector<8x1xf32>
    %57 = vector.broadcast %49 : vector<8x1xf32> to vector<8x32xf32>
    %58 = arith.subf %45, %57 : vector<8x32xf32>
    %cst_36 = arith.constant 9.99999974E-6 : f32
    %59 = vector.broadcast %cst_36 : f32 to vector<8x1xf32>
    %60 = arith.addf %56, %59 : vector<8x1xf32>
    %61 = math.rsqrt %60 : vector<8x1xf32>
    %62 = vector.broadcast %61 : vector<8x1xf32> to vector<8x32xf32>
    %63 = arith.mulf %58, %62 : vector<8x32xf32>
    %64 = vector.broadcast %9 : vector<1x32xf32> to vector<8x32xf32>
    %65 = arith.mulf %63, %64 : vector<8x32xf32>
    %66 = vector.broadcast %10 : vector<1x32xf32> to vector<8x32xf32>
    %67 = arith.addf %65, %66 : vector<8x32xf32>
    %c0_37 = arith.constant 0 : index
    %c0_38 = arith.constant 0 : index
    %68 = vector.load %arg11[%c0_37, %c0_38] : memref<32x128xf32, #tpu.memory_space<vmem>>, vector<32x128xf32>
    %cst_39 = arith.constant dense<0.000000e+00> : vector<8x128xf32>
    %69 = tpu.matmul %67, %68, %cst_39 {dimension_numbers = #tpu.dot_dimension_numbers<[1], [0], [0], [1], [0, 0, 1, 1], [], []>} : vector<8x32xf32>, vector<32x128xf32>, vector<8x128xf32> -> vector<8x128xf32>
    %70 = vector.broadcast %7 : vector<1x128xf32> to vector<8x128xf32>
    %71 = arith.addf %69, %70 : vector<8x128xf32>
    %cst_40 = arith.constant 5.000000e-01 : f32
    %72 = vector.broadcast %cst_40 : f32 to vector<8x128xf32>
    %73 = arith.mulf %72, %71 : vector<8x128xf32>
    %cst_41 = arith.constant 0.707106769 : f32
    %74 = vector.broadcast %cst_41 : f32 to vector<8x128xf32>
    %75 = arith.mulf %71, %74 : vector<8x128xf32>
    %76 = math.erf %75 : vector<8x128xf32>
    %cst_42 = arith.constant 1.000000e+00 : f32
    %77 = vector.broadcast %cst_42 : f32 to vector<8x128xf32>
    %78 = arith.addf %77, %76 : vector<8x128xf32>
    %79 = arith.mulf %73, %78 : vector<8x128xf32>
    %c0_43 = arith.constant 0 : index
    %c0_44 = arith.constant 0 : index
    %80 = vector.load %arg13[%c0_43, %c0_44] : memref<128x32xf32, #tpu.memory_space<vmem>>, vector<128x32xf32>
    %cst_45 = arith.constant dense<0.000000e+00> : vector<8x32xf32>
    %81 = tpu.matmul %79, %80, %cst_45 {dimension_numbers = #tpu.dot_dimension_numbers<[1], [0], [0], [1], [0, 0, 1, 1], [], []>} : vector<8x128xf32>, vector<128x32xf32>, vector<8x32xf32> -> vector<8x32xf32>
    %82 = vector.broadcast %8 : vector<1x32xf32> to vector<8x32xf32>
    %83 = arith.addf %81, %82 : vector<8x32xf32>
    %84 = arith.addf %83, %83 : vector<8x32xf32>
    %cst_46 = arith.constant dense<0.000000e+00> : vector<8xf32>
    %85 = vector.multi_reduction <add>, %84, %cst_46 [1] : vector<8x32xf32> to vector<8xf32>
    %86 = vector.shape_cast %85 : vector<8xf32> to vector<8x1xf32>
    %cst_47 = arith.constant 3.200000e+01 : f32
    %87 = vector.broadcast %cst_47 : f32 to vector<8x1xf32>
    %88 = arith.divf %86, %87 : vector<8x1xf32>
    %89 = vector.broadcast %88 : vector<8x1xf32> to vector<8x32xf32>
    %90 = arith.subf %84, %89 : vector<8x32xf32>
    %91 = arith.mulf %90, %90 : vector<8x32xf32>
    %cst_48 = arith.constant dense<0.000000e+00> : vector<8xf32>
    %92 = vector.multi_reduction <add>, %91, %cst_48 [1] : vector<8x32xf32> to vector<8xf32>
    %93 = vector.shape_cast %92 : vector<8xf32> to vector<8x1xf32>
    %cst_49 = arith.constant 3.200000e+01 : f32
    %94 = vector.broadcast %cst_49 : f32 to vector<8x1xf32>
    %95 = arith.divf %93, %94 : vector<8x1xf32>
    %96 = vector.broadcast %88 : vector<8x1xf32> to vector<8x32xf32>
    %97 = arith.subf %84, %96 : vector<8x32xf32>
    %cst_50 = arith.constant 9.99999974E-6 : f32
    %98 = vector.broadcast %cst_50 : f32 to vector<8x1xf32>
    %99 = arith.addf %95, %98 : vector<8x1xf32>
    %100 = math.rsqrt %99 : vector<8x1xf32>
    %101 = vector.broadcast %100 : vector<8x1xf32> to vector<8x32xf32>
    %102 = arith.mulf %97, %101 : vector<8x32xf32>
    %103 = vector.broadcast %11 : vector<1x32xf32> to vector<8x32xf32>
    %104 = arith.mulf %102, %103 : vector<8x32xf32>
    %105 = vector.broadcast %12 : vector<1x32xf32> to vector<8x32xf32>
    %106 = arith.addf %104, %105 : vector<8x32xf32>
    %c0_51 = arith.constant 0 : index
    %c0_52 = arith.constant 0 : index
    %c0_53 = arith.constant 0 : index
    %107 = vector.load %arg17[%c0_51, %c0_52, %c0_53] : memref<1x8x32xf32, #tpu.memory_space<vmem>>, vector<1x8x32xf32>
    %108 = vector.shape_cast %107 : vector<1x8x32xf32> to vector<8x32xf32>
    %109 = vector.shape_cast %106 : vector<8x32xf32> to vector<1x8x32xf32>
    tpu.vector_store %arg17[%c0_51, %c0_52, %c0_53], %109 {strides = array<i32>} : memref<1x8x32xf32, #tpu.memory_space<vmem>>, vector<1x8x32xf32>,
    return
  }
  func.func @transform_0(%arg0: i32, %arg1: i32) -> (i32, i32, i32) {
    %c0_i32 = arith.constant 0 : i32
    %c0_i32_0 = arith.constant 0 : i32
    %c0_i32_1 = arith.constant 0 : i32
    return %arg0, %c0_i32, %c0_i32_0 : i32, i32, i32
  }
  func.func @transform_1(%arg0: i32, %arg1: i32) -> (i32, i32) {
    %c0_i32 = arith.constant 0 : i32
    %c0_i32_0 = arith.constant 0 : i32
    %c0_i32_1 = arith.constant 0 : i32
    return %c0_i32, %c0_i32_0 : i32, i32
  }
  func.func @transform_2(%arg0: i32, %arg1: i32) -> (i32, i32) {
    %c0_i32 = arith.constant 0 : i32
    %c0_i32_0 = arith.constant 0 : i32
    %c0_i32_1 = arith.constant 0 : i32
    return %c0_i32, %c0_i32_0 : i32, i32
  }
  func.func @transform_3(%arg0: i32, %arg1: i32) -> (i32, i32) {
    %c0_i32 = arith.constant 0 : i32
    %c0_i32_0 = arith.constant 0 : i32
    %c0_i32_1 = arith.constant 0 : i32
    return %c0_i32, %c0_i32_0 : i32, i32
  }
  func.func @transform_4(%arg0: i32, %arg1: i32) -> (i32, i32) {
    %c0_i32 = arith.constant 0 : i32
    %c0_i32_0 = arith.constant 0 : i32
    %c0_i32_1 = arith.constant 0 : i32
    return %c0_i32, %c0_i32_0 : i32, i32
  }
  func.func @transform_5(%arg0: i32, %arg1: i32) -> (i32, i32) {
    %c0_i32 = arith.constant 0 : i32
    %c0_i32_0 = arith.constant 0 : i32
    %c0_i32_1 = arith.constant 0 : i32
    return %c0_i32, %c0_i32_0 : i32, i32
  }
  func.func @transform_6(%arg0: i32, %arg1: i32) -> (i32, i32) {
    %c0_i32 = arith.constant 0 : i32
    %c0_i32_0 = arith.constant 0 : i32
    %c0_i32_1 = arith.constant 0 : i32
    return %c0_i32, %c0_i32_0 : i32, i32
  }
  func.func @transform_7(%arg0: i32, %arg1: i32) -> (i32, i32) {
    %c0_i32 = arith.constant 0 : i32
    %c0_i32_0 = arith.constant 0 : i32
    %c0_i32_1 = arith.constant 0 : i32
    return %c0_i32, %c0_i32_0 : i32, i32
  }
  func.func @transform_8(%arg0: i32, %arg1: i32) -> (i32, i32) {
    %c0_i32 = arith.constant 0 : i32
    %c0_i32_0 = arith.constant 0 : i32
    %c0_i32_1 = arith.constant 0 : i32
    return %c0_i32, %c0_i32_0 : i32, i32
  }
  func.func @transform_9(%arg0: i32, %arg1: i32) -> (i32, i32) {
    %c0_i32 = arith.constant 0 : i32
    %c0_i32_0 = arith.constant 0 : i32
    %c0_i32_1 = arith.constant 0 : i32
    return %c0_i32, %c0_i32_0 : i32, i32
  }
  func.func @transform_10(%arg0: i32, %arg1: i32) -> (i32, i32) {
    %c0_i32 = arith.constant 0 : i32
    %c0_i32_0 = arith.constant 0 : i32
    %c0_i32_1 = arith.constant 0 : i32
    return %c0_i32, %c0_i32_0 : i32, i32
  }
  func.func @transform_11(%arg0: i32, %arg1: i32) -> (i32, i32) {
    %c0_i32 = arith.constant 0 : i32
    %c0_i32_0 = arith.constant 0 : i32
    %c0_i32_1 = arith.constant 0 : i32
    return %c0_i32, %c0_i32_0 : i32, i32
  }
  func.func @transform_12(%arg0: i32, %arg1: i32) -> (i32, i32) {
    %c0_i32 = arith.constant 0 : i32
    %c0_i32_0 = arith.constant 0 : i32
    %c0_i32_1 = arith.constant 0 : i32
    return %c0_i32, %c0_i32_0 : i32, i32
  }
  func.func @transform_13(%arg0: i32, %arg1: i32) -> (i32, i32) {
    %c0_i32 = arith.constant 0 : i32
    %c0_i32_0 = arith.constant 0 : i32
    %c0_i32_1 = arith.constant 0 : i32
    return %c0_i32, %c0_i32_0 : i32, i32
  }
  func.func @transform_14(%arg0: i32, %arg1: i32) -> (i32, i32) {
    %c0_i32 = arith.constant 0 : i32
    %c0_i32_0 = arith.constant 0 : i32
    %c0_i32_1 = arith.constant 0 : i32
    return %c0_i32, %c0_i32_0 : i32, i32
  }
  func.func @transform_15(%arg0: i32, %arg1: i32) -> (i32, i32, i32) {
    %c0_i32 = arith.constant 0 : i32
    %c0_i32_0 = arith.constant 0 : i32
    return %arg0, %arg1, %c0_i32 : i32, i32, i32
  }
}

</mosaic_0001>

<bundles_post_ra>
// kernel: tpu_custom_call.1
= control target key start
LH: loop header
LB: loop body
LE: loop exit
PB: predicated region body
PF: predicated region fallthrough
CT: control target
= control target key end

     0   :  { %s3111_s0 = inlined_call_operand.vmem [shape: f32[2,8,32], index: 0, kind: input, shape index: {}]   ;;  %s3112_s1 = inlined_call_operand.vmem [shape: f32[32,32], index: 1, kind: input, shape index: {}]   ;;  %s3113_s2 = inlined_call_operand.vmem [shape: f32[1,32], index: 2, kind: input, shape index: {}]   ;;  %s3114_s3 = inlined_call_operand.vmem [shape: f32[32,64], index: 3, kind: input, shape index: {}]   ;;  %s3115_s4 = inlined_call_operand.vmem [shape: f32[1,64], index: 4, kind: input, shape index: {}]   ;;  %s3116_s5 = inlined_call_operand.vmem [shape: f32[32,32], index: 5, kind: input, shape index: {}]   ;;  %s3117_s6 = inlined_call_operand.vmem [shape: f32[1,32], index: 6, kind: input, shape index: {}]   ;;  %s3118_s7 = inlined_call_operand.vmem [shape: f32[1,32], index: 7, kind: input, shape index: {}]   ;;  %s3119_s8 = inlined_call_operand.vmem [shape: f32[1,32], index: 8, kind: input, shape index: {}]   ;;  %s3120_s9 = inlined_call_operand.vmem [shape: f32[32,128], index: 9, kind: input, shape index: {}]   ;;  %s3121_s10 = inlined_call_operand.vmem [shape: f32[1,128], index: 10, kind: input, shape index: {}]   ;;  %s3122_s11 = inlined_call_operand.vmem [shape: f32[128,32], index: 11, kind: input, shape index: {}]   ;;  %s3123_s12 = inlined_call_operand.vmem [shape: f32[1,32], index: 12, kind: input, shape index: {}]   ;;  %s3124_s13 = inlined_call_operand.vmem [shape: f32[1,32], index: 13, kind: input, shape index: {}]   ;;  %s3125_s14 = inlined_call_operand.vmem [shape: f32[1,32], index: 14, kind: input, shape index: {}]   ;;  %s3126_s15 = inlined_call_operand.hbm [shape: f32[2,8,32], index: 15, kind: output, shape index: {}]  }
   0x1   :  { %3130 = sst [smem:[#allocation11_spill]] %s3111_s0 }
   0x2   :  { %3131 = sst [smem:[#allocation12_spill]] %s3112_s1 }
   0x3   :  { %3132 = sst [smem:[#allocation13_spill]] %s3113_s2 }
   0x4   :  { %3133 = sst [smem:[#allocation14_spill]] %s3114_s3 }
   0x5   :  { %20 = vsyncpa [#allocation5], 0 }
   0x6   :  { %22 = vsyncpa [#allocation5 + $0x1], 0  ;;  %s2773_s18 = smov 0   ;;  %s2775_s19 = smov 0  }
   0x7   :  { %s2777_s20 = smov 0   ;;  %s2779_s21 = smov 0  }
   0x8   :  { %s2781_s22 = smov 0   ;;  %s2783_s23 = smov 0  }
   0x9 LB: > { %3134 = sst [smem:[#allocation7_spill]] %s2667_s20  ;;  %s2305_s24 = sadd.s32 4294967295, %s2679_s23   ;;  %s2679_s23 = sphi %s2783_s23, %s28_s23   ;;  %s2675_s22 = sphi %s2781_s22, %s3147_s22   ;;  %s2671_s21 = sphi %s2779_s21, %s3146_s21   ;;  %s2667_s20 = sphi %s2777_s20, %s3145_s20   ;;  %s2663_s19 = sphi %s2775_s19, %s3149_s19   ;;  %s2659_s18 = sphi %s2773_s18, %s3148_s18  }
   0xa   : > { %3135 = sst [smem:[#allocation8_spill]] %s2675_s22  ;;  %s2306_s25 = sadd.s32 4294967294, %s2679_s23  }
   0xb   : > { %s40_s26 = sadd.s32 1, %s2675_s22  ;;  %s369_s27 = sadd.s32 1, %s2667_s20 }
   0xc   : > { %p42_p0 = scmp.ge.s32.totalorder %s40_s26, 2  ;;  %p379_p1 = scmp.ne.s32.totalorder %s2667_s20, %s2663_s19 }
   0xd   : > { %p380_p2 = scmp.eq.s32.totalorder %s2305_s24, 1  ;;  %p385_p3 = scmp.ne.s32.totalorder %s2663_s19, %s2659_s18 }
   0xe   : > { %s3151_s26 = smov (%p42_p0, %s40_s26), 0  ;;  %p386_p5 = scmp.eq.s32.totalorder %s2306_s25, 1 }
   0xf   : > { %3136 = sst [smem:[#allocation9_spill]] %s3151_s26  ;;  %p2813_p4 = por %p380_p2, %p379_p1 }
  0x10   : > { %s364_s29 = ssub.s32 %s2675_s22, %s3151_s26  ;;  %p2309_p6 = scmp.ge.s32.totalorder %s2679_s23, 1 }
  0x11   : > { %p367_p7 = scmp.eq.s32.totalorder %s364_s29, 0  ;;  %p2820_p8 = por %p386_p5, %p385_p3 }
  0x12   : > { %p453_p9 = scmp.lt.s32.totalorder %s2679_s23, 3 }
  0x13   : > { %s2826_s16 = scalar_select %p367_p7, %s2667_s20, %s369_s27  }
  0x14   : > { %p454_p10 = pnand %p2309_p6, %p453_p9 }
  0x15   : > { %3139 = sst [smem:[#allocation10_spill]] %s2826_s16  ;;  %p500_p11 = scmp.lt.s32.totalorder (!%p454_p10), %s2671_s21, 1 }
  0x16   : > { %457 = sbr.rel (%p454_p10) target bundleno = 2766 (0xace), region = 80  ;;  %s3140_s3 = sld [smem:[#allocation14_spill]] (!%p454_p10) }
  0x17   : > { %s3141_s0 = sld [smem:[#allocation11_spill]] (!%p454_p10)  ;;  %s2685_s22 = smov (!%p454_p10), 112  }
  0x18   : > { %s3142_s1 = sld [smem:[#allocation12_spill]] (!%p454_p10)  ;;  %s2686_s16 = smov (!%p454_p10), 96  }
  0x19   : > { %s3143_s2 = sld [smem:[#allocation13_spill]] (!%p454_p10)  ;;  %s2691_s29 = smov (!%p454_p10), 24  }
  0x1a   : > { %s2340_s26 = sshll.u32 (!%p454_p10), %s2671_s21, 7 }
  0x1b   : > { %v2681_v1 = vmov 0.0   ;;  %vm2682_vm0 = vmmov 0   ;;  %s501_s27 = scalar_select %p500_p11, %s2671_s21, 1  ;;  %vm531_vm1 = vcmask 261120   ;;  %v2312_v10 = vld [vmem:[%s3115_s4] ss:$0 sm:$0xff] }
  0x1c   : > { %v524_v0 = vld [vmem:[%s3140_s3 + $0x18] sm:$0xff]  ;;  %2396 = vmatprep.subr.mxu1 %v2681_v1  ;;  %v523_v2 = vld [vmem:[%s3140_s3 + $0x10] sm:$0xff]  ;;  %2404 = vmatprep.mubr.msk.f32.mxu1 %vm2682_vm0, %v2681_v1  ;;  %v522_v3 = vld [vmem:[%s3140_s3 + $0x8] sm:$0xff]  ;;  %vm853_vm2 = vcmask 64512   ;;  %vm1895_vm3 = vcmask 130048   ;;  %vm1897_vm4 = vcmask 195584  }
  0x1d   : > { %2397 = vmatpush3.msra.mxu1 %v524_v0  ;;  %2418 = vmatprep.subr.mxu0 %v2681_v1  ;;  %s2311_s25 = sshll.u32 %s501_s27, 3  ;;  %v521_v4 = vld [vmem:[%s3140_s3] sm:$0xff]  ;;  %s2683_s27 = smov 104  }
  0x1e   : > { %2398 = vmatprep.subr.mxu1 %v2681_v1  ;;  %2420 = vmatprep.mubr.msk.f32.mxu0 %vm2682_vm0, %v2681_v1  ;;  %s503_s20 = scalar_lea.vmem %s3141_s0, %s2311_s25  ;;  %v614_v6 = vld [vmem:[%s3142_s1 + $0x18] sm:$0xff]  ;;  %v613_v7 = vld [vmem:[%s3142_s1 + $0x10] sm:$0xff]  ;;  %v612_v8 = vld [vmem:[%s3142_s1 + $0x8] sm:$0xff]  ;;  %s2690_s25 = smov 8  }
  0x1f   : > { %2399 = vmatpush3.msra.mxu1 %v523_v2  ;;  %v2853_v5 = vld [vmem:[%s503_s20] sm:$0xff]  ;;  %s2684_s20 = smov 120  }
  0x20   : > { %2400 = vmatprep.subr.mxu1 %v2681_v1  ;;  %v611_v9 = vld [vmem:[%s3142_s1] sm:$0xff] }
  0x21   : > { %2401 = vmatpush3.msra.mxu1 %v522_v3  ;;  %v2314_v14 = vld [vmem:[%s3143_s2] ss:$0 sm:$0xff]  ;;  %s2233_s2 = scalar_lea.hbm %s3126_s15, %s2340_s26 }
  0x22   : > { %2402 = vmatprep.subr.mxu1 %v2681_v1 }
  0x23   : > { %2403 = vmatpush3.msra.mxu1 %v521_v4 }
  0x24   : > { %2405 = vmatmul.mubr.msk.f32.vlgmr.msra.gmra.mxu1 %vm531_vm1, %v2853_v5  ;;  %2407 = vmatprep.subr.mxu1 %v2681_v1 }
  0x25   : > { %2408 = vmatpush3.msra.mxu1 %v614_v6  ;;  %2415 = vmatprep.mubr.msk.f32.mxu1 %vm2682_vm0, %v2681_v1 }
  0x26   : > { %2409 = vmatprep.subr.mxu1 %v2681_v1 }
  0x27   : > { %2410 = vmatpush3.msra.mxu1 %v613_v7 }
  0x28   : > { %2411 = vmatprep.subr.mxu1 %v2681_v1 }
  0x29   : > { %2412 = vmatpush3.msra.mxu1 %v612_v8 }
  0x2a   : > { %2413 = vmatprep.subr.mxu1 %v2681_v1 }
  0x2b   : > { %2414 = vmatpush3.msra.mxu1 %v611_v9 }
  0x2c   : > { %2416 = vmatmul.mubr.msk.f32.vlgmr.msra.gmra.mxu1 %vm531_vm1, %v2853_v5  ;;  %2423 = vmatprep.subr.mxu1 %v2681_v1 }
  0x2d   : > { %2425 = vmatprep.mubr.msk.f32.mxu1 %vm2682_vm0, %v2681_v1 }
  0xe4   : > { %v601_v11 = vpop.f32.mrf.mxu1 }
  0xe5   : > { %v2884_v12 = vadd.f32 %v2312_v10, %v601_v11 }
  0xe6   : > { %v2406_v13 = vpop.f32.mrf.mxu1 }
  0xe7   : > { %605 = vst.msk [vmem:[#allocation2] sm:$0xff] %vm531_vm1, %v2884_v12 }
  0xec   : > { %v691_v15 = vpop.f32.mrf.mxu1 }
  0xed   : > { %v692_v16 = vadd.f32 %v2314_v14, %v691_v15 }
  0xee   : > { %v703_v17 = vld [vmem:[#allocation2] sm:$0xff]  ;;  %v2417_v18 = vpop.f32.mrf.mxu1 }
  0xef   : > { %711 = vrot.lane.b32.xlu1 %v703_v17, %s2683_s27  ;;  %705 = vrot.lane.b32.xlu0 %v703_v17, %s2684_s20  ;;  %v695_v19 = vmul.f32 0.35355338, %v692_v16 }
  0xf3   : > { %708 = vrot.lane.b32.xlu0 %v703_v17, %s2685_s22  ;;  %697 = vrot.lane.b32.xlu1 %v695_v19, %s2684_s20 }
  0xf7   : > { %701 = vrot.lane.b32.xlu1 %v695_v19, %s2683_s27 }
 0x111   : > { %725 = vxpose.xlu0.b32.start.end [1/1] (short) (narrow) %v703_v17, 8 }
 0x13a   : > { %699 = vrot.lane.b32.xlu0 %v695_v19, %s2685_s22 }
 0x161   : > { %v706_v20 = vpop.permute.xlu0 %705  ;;  %v712_v22 = vpop.permute.xlu1 %711 }
 0x162   : > { %757 = vxpose.xlu1.b32.start.end [1/1] (short) (narrow) %v706_v20, 8 }
 0x165   : > { %v709_v21 = vpop.permute.xlu0 %708  ;;  %v698_v24 = vpop.permute.xlu1 %697 }
 0x166   : > { %789 = vxpose.xlu0.b32.start.end [1/1] (short) (narrow) %v709_v21, 8 }
 0x169   : > { %v702_v25 = vpop.permute.xlu1 %701 }
 0x16a   : > { %821 = vxpose.xlu0.b32.start.end [1/1] (short) (narrow) %v712_v22, 8 }
 0x18d   : > { %v741_v23 = vpop.trf.xlu0 }
 0x18e   : > { %2419 = vmatpush3.msra.mxu0 %v741_v23 }
 0x18f   : > { %2421 = vmatmul.mubr.msk.f32.vlgmr.msra.gmra.mxu0 %vm853_vm2, %v695_v19  ;;  %2428 = vmatprep.subr.mxu0 %v2681_v1 }
 0x190   : > { %2430 = vmatprep.mubr.msk.f32.mxu0 %vm2682_vm0, %v2681_v1 }
 0x1ac   : > { %v700_v26 = vpop.permute.xlu0 %699 }
 0x1de   : > { %v773_v27 = vpop.trf.xlu1 }
 0x1df   : > { %2424 = vmatpush3.msra.mxu1 %v773_v27 }
 0x1e0   : > { %2426 = vmatmul.mubr.msk.f32.vlgmr.msra.gmra.mxu1 %vm853_vm2, %v698_v24  ;;  %2433 = vmatprep.subr.mxu1 %v2681_v1 }
 0x1e1   : > { %2435 = vmatprep.mubr.msk.f32.mxu1 %vm2682_vm0, %v2681_v1 }
 0x1e2   : > { %v805_v28 = vpop.trf.xlu0 }
 0x1e3   : > { %2429 = vmatpush3.msra.mxu0 %v805_v28 }
 0x1e4   : > { %2431 = vmatmul.mubr.msk.f32.vlgmr.msra.gmra.mxu0 %vm853_vm2, %v700_v26  ;;  %2438 = vmatprep.subr.mxu0 %v2681_v1 }
 0x1e5   : > { %2440 = vmatprep.mubr.msk.f32.mxu0 %vm2682_vm0, %v2681_v1 }
 0x1e6   : > { %v837_v29 = vpop.trf.xlu0 }
 0x1e7   : > { %2434 = vmatpush3.msra.mxu1 %v837_v29  ;;  %v1902_v29 = vld [vmem:[%s3116_s5 + $0x18] sm:$0xff] }
 0x1e8   : > { %2436 = vmatmul.mubr.msk.f32.vlgmr.msra.gmra.mxu1 %vm853_vm2, %v702_v25  ;;  %2443 = vmatprep.subr.mxu1 %v2681_v1 }
 0x1e9   : > { %2445 = vmatprep.mubr.msk.f32.mxu1 %vm2682_vm0, %v2681_v1 }
 0x24f   : > { %v922_v30 = vpop.f32.mrf.mxu0 }
 0x250   : > { %v1142_v31 = vsel %vm853_vm2, %v922_v30, -inf }
 0x251   : > { %1143 = vmax.xlane.f32.xlu0 %v1142_v31  ;;  %v2422_v32 = vpop.f32.mrf.mxu0 }
 0x252   : > { %v1751_v32 = vlaneseq }
 0x2a0   : > { %v994_v33 = vpop.f32.mrf.mxu1 }
 0x2a1   : > { %v1145_v34 = vsel %vm853_vm2, %v994_v33, -inf }
 0x2a2   : > { %1146 = vmax.xlane.f32.xlu1 %v1145_v34  ;;  %v2427_v35 = vpop.f32.mrf.mxu1  ;;  %v2688_v34 = vmov 1934713408  }
 0x2a3   : > { %v1781_v35 = vunpack.c.l.s4 %v2688_v34 }
 0x2a4   : > { %v1066_v36 = vpop.f32.mrf.mxu0 }
 0x2a5   : > { %v1148_v37 = vsel %vm853_vm2, %v1066_v36, -inf }
 0x2a6   : > { %v2432_v38 = vpop.f32.mrf.mxu0  ;;  %1149 = vmax.xlane.f32.xlu1 %v1148_v37  ;;  %v1752_v37 = vshrl.u32 %v1751_v32, 7 }
 0x2a8   : > { %v1138_v39 = vpop.f32.mrf.mxu1 }
 0x2a9   : > { %v1151_v40 = vsel %vm853_vm2, %v1138_v39, -inf }
 0x2aa   : > { %1152 = vmax.xlane.f32.xlu0 %v1151_v40  ;;  %v2437_v41 = vpop.f32.mrf.mxu1 }
 0x2b7   : > { %607 = vrot.lane.b32.xlu1 %v2884_v12, %s2686_s16  ;;  %s2689_s16 = smov 16  }
 0x2da   : > { %v1144_v46 = vpop.xlane.xlu0 %1143 }
 0x2db   : > { %v1154_v48 = vsub.f32 %v922_v30, %v1144_v46  ;;  %v2687_v30 = vmov 1983009808  }
 0x2dc   : > { %v1749_v31 = vunpack.c.l.s4 %v2687_v30 }
 0x2dd   : > { %v1158_v52 = vmul.f32 1.442695, %v1154_v48 }
 0x32b   : > { %v1147_v42 = vpop.xlane.xlu1 %1146 }
 0x32c   : > { %v1155_v47 = vsub.f32 %v994_v33, %v1147_v42 }
 0x32e   : > { %v1160_v50 = vmul.f32 1.442695, %v1155_v47 }
 0x32f   : > { %v1150_v43 = vpop.xlane.xlu1 %1149 }
 0x330   : > { %v1156_v53 = vsub.f32 %v1066_v36, %v1150_v43  ;;  %2581 = vpow2.f32 %v1160_v50  ;;  %v1750_v36 = vunpack.c.0.s8 %v1749_v31 }
 0x331   : > { %2583 = vpow2.f32 %v1158_v52 }
 0x332   : > { %v1162_v55 = vmul.f32 1.442695, %v1156_v53  ;;  %v1753_v40 = vsub.s32 %v1750_v36, %v1752_v37 }
 0x333   : > { %v608_v44 = vpop.permute.xlu1 %607  ;;  %v1153_v49 = vpop.xlane.xlu0 %1152 }
 0x334   : > { %610 = vst.msk [vmem:[#allocation3] sm:$0xff] %vm531_vm1, %v608_v44  ;;  %v1157_v51 = vsub.f32 %v1138_v39, %v1153_v49  ;;  %v1782_v39 = vunpack.c.0.s8 %v1781_v35 }
 0x336   : > { %v1164_v54 = vmul.f32 1.442695, %v1157_v51  ;;  %v1785_v47 = vsub.s32 %v1782_v39, %v1752_v37  ;;  %v2013_v39 = vld [vmem:[%s3120_s9 + $0x10] sm:$0xff] }
 0x338   : > { %2585 = vpow2.f32 %v1164_v54 }
 0x339   : > { %2587 = vpow2.f32 %v1162_v55 }
 0x33b   : > { %v714_v45 = vld [vmem:[#allocation3] sm:$0xff] }
 0x33c   : > { %719 = vrot.lane.b32.xlu1 %v714_v45, %s2685_s22  ;;  %716 = vrot.lane.b32.xlu0 %v714_v45, %s2684_s20  ;;  %s497_s22 = sand.u32 1, %s2663_s19  }
 0x33d   : > { %v2582_v56 = vpop.eup %2581  ;;  %s2221_s3 = scalar_lea.sflag [#allocation5], %s497_s22 }
 0x33e   : > { %v2584_v57 = vpop.eup %2583  ;;  %v1169_v58 = vsel %vm853_vm2, %v2582_v56, 0.0 }
 0x33f   : > { %v1166_v60 = vsel %vm853_vm2, %v2584_v57, 0.0 }
 0x340   : > { %722 = vrot.lane.b32.xlu0 %v714_v45, %s2683_s27 }
 0x345   : > { %v2586_v59 = vpop.eup %2585 }
 0x346   : > { %v2588_v61 = vpop.eup %2587  ;;  %v1175_v62 = vsel %vm853_vm2, %v2586_v59, 0.0 }
 0x347   : > { %v1172_v63 = vsel %vm853_vm2, %v2588_v61, 0.0 }
 0x35f   : > { %1170 = vadd.xlane.f32.xlu0 %v1169_v58 }
 0x360   : > { %1167 = vadd.xlane.f32.xlu1 %v1166_v60 }
 0x363   : > { %1176 = vadd.xlane.f32.xlu0 %v1175_v62 }
 0x364   : > { %1173 = vadd.xlane.f32.xlu1 %v1172_v63 }
 0x397   : > { %1186 = vxpose.xlu1.b32.start.end [1/1] (short) (narrow) %v714_v45, 8 }
 0x3ae   : > { %v717_v0 = vpop.permute.xlu0 %716  ;;  %v720_v2 = vpop.permute.xlu1 %719 }
 0x3af   : > { %1218 = vxpose.xlu0.b32.start.end [1/1] (short) (narrow) %v717_v0, 8 }
 0x3b2   : > { %v723_v3 = vpop.permute.xlu0 %722 }
 0x3b3   : > { %1250 = vxpose.xlu0.b32.start.end [1/1] (short) (narrow) %v720_v2, 8  ;;  %1282 = vxpose.xlu1.b32.start.end [1/1] (short) (narrow) %v723_v3, 8  ;;  %v1899_v3 = vld [vmem:[%s3116_s5] sm:$0xff] }
 0x3e8   : > { %v1171_v4 = vpop.xlane.xlu0 %1170 }
 0x3e9   : > { %2589 = vrcp.f32 %v1171_v4  ;;  %v1168_v6 = vpop.xlane.xlu1 %1167 }
 0x3ea   : > { %2591 = vrcp.f32 %v1168_v6 }
 0x3ec   : > { %v1177_v15 = vpop.xlane.xlu0 %1176 }
 0x3ed   : > { %v1174_v11 = vpop.xlane.xlu1 %1173 }
 0x3ee   : > { %2593 = vrcp.f32 %v1174_v11 }
 0x3ef   : > { %2595 = vrcp.f32 %v1177_v15 }
 0x3f6   : > { %v2590_v7 = vpop.eup %2589 }
 0x3f7   : > { %v2592_v8 = vpop.eup %2591  ;;  %v1183_v9 = vmul.f32 %v2590_v7, %v2582_v56  ;;  %v1901_v56 = vld [vmem:[%s3116_s5 + $0x10] sm:$0xff] }
 0x3f8   : > { %v1182_v10 = vmul.f32 %v2592_v8, %v2584_v57  ;;  %v1900_v57 = vld [vmem:[%s3116_s5 + $0x8] sm:$0xff] }
 0x3f9   : > { %2444 = vmatpush3.xpose.msk.msra.mxu1 %vm853_vm2, %v1183_v9 }
 0x3fa   : > { %2439 = vmatpush3.xpose.msk.msra.mxu0 %vm853_vm2, %v1182_v10  ;;  %2453 = vmatprep.subr.mxu1 %v2681_v1 }
 0x3fb   : > { %2448 = vmatprep.subr.mxu0 %v2681_v1  ;;  %v2594_v12 = vpop.eup %2593 }
 0x3fc   : > { %v1184_v14 = vmul.f32 %v2594_v12, %v2588_v61  ;;  %v2596_v16 = vpop.eup %2595 }
 0x3fd   : > { %v1185_v18 = vmul.f32 %v2596_v16, %v2586_v59 }
 0x413   : > { %v1202_v13 = vpop.trf.xlu1 }
 0x414   : > { %2441 = vmatmul.mubr.msk.f32.vlgmr.msra.gmra.mxu0 %vm853_vm2, %v1202_v13 }
 0x415   : > { %2449 = vmatpush3.xpose.msk.msra.mxu0 %vm853_vm2, %v1184_v14  ;;  %2450 = vmatprep.mubr.msk.f32.mxu0 %vm2682_vm0, %v2681_v1 }
 0x416   : > { %2480 = vmatprep.subr.mxu0 %v2681_v1 }
 0x42b   : > { %v1234_v17 = vpop.trf.xlu0 }
 0x42c   : > { %2446 = vmatmul.mubr.msk.f32.vlgmr.msra.gmra.mxu1 %vm853_vm2, %v1234_v17 }
 0x42d   : > { %2454 = vmatpush3.xpose.msk.msra.mxu1 %vm853_vm2, %v1185_v18  ;;  %2455 = vmatprep.mubr.msk.f32.mxu1 %vm2682_vm0, %v2681_v1 }
 0x42e   : > { %2458 = vmatprep.subr.mxu1 %v2681_v1 }
 0x42f   : > { %v1298_v19 = vpop.trf.xlu1  ;;  %v1266_v20 = vpop.trf.xlu0 }
 0x430   : > { %2451 = vmatmul.mubr.msk.f32.vlgmr.msra.gmra.mxu0 %vm853_vm2, %v1266_v20  ;;  %2456 = vmatmul.mubr.msk.f32.vlgmr.msra.gmra.mxu1 %vm853_vm2, %v1298_v19 }
 0x431   : > { %2466 = vmatprep.mubr.msk.f32.mxu1 %vm2682_vm0, %v2681_v1  ;;  %2512 = vmatprep.mubr.msk.f32.mxu0 %vm2682_vm0, %v2681_v1 }
 0x432   : > { %2459 = vmatpush3.msra.mxu1 %v1902_v29 }
 0x433   : > { %2460 = vmatprep.subr.mxu1 %v2681_v1 }
 0x434   : > { %2461 = vmatpush3.msra.mxu1 %v1901_v56  ;;  %v2108_v56 = vld [vmem:[%s3122_s11 + $0x48] sm:$0xff] }
 0x435   : > { %2462 = vmatprep.subr.mxu1 %v2681_v1 }
 0x436   : > { %2463 = vmatpush3.msra.mxu1 %v1900_v57  ;;  %v2107_v57 = vld [vmem:[%s3122_s11 + $0x40] sm:$0xff] }
 0x437   : > { %2464 = vmatprep.subr.mxu1 %v2681_v1 }
 0x438   : > { %2465 = vmatpush3.msra.mxu1 %v1899_v3  ;;  %v2334_v3 = vld [vmem:[%s3121_s10] ss:$0 sm:$0xff] }
 0x439   : > { %2469 = vmatprep.subr.mxu1 %v2681_v1 }
 0x4d4   : > { %v1386_v21 = vpop.f32.mrf.mxu0 }
 0x4d5   : > { %1618 = vxpose.xlu0.b32.start.end [1/1] (short) (narrow) %v1386_v21, 8 }
 0x4d6   : > { %v2442_v22 = vpop.f32.mrf.mxu0 }
 0x4ec   : > { %v1462_v23 = vpop.f32.mrf.mxu1 }
 0x4ed   : > { %1650 = vxpose.xlu1.b32.start.end [1/1] (short) (narrow) %v1462_v23, 8 }
 0x4ee   : > { %v2447_v24 = vpop.f32.mrf.mxu1 }
 0x4f0   : > { %v1538_v25 = vpop.f32.mrf.mxu0  ;;  %v1614_v26 = vpop.f32.mrf.mxu1 }
 0x4f1   : > { %1682 = vxpose.xlu0.b32.start.end [1/1] (short) (narrow) %v1538_v25, 8  ;;  %1714 = vxpose.xlu1.b32.start.end [1/1] (short) (narrow) %v1614_v26, 8 }
 0x4f2   : > { %v2452_v27 = vpop.f32.mrf.mxu0  ;;  %v2457_v28 = vpop.f32.mrf.mxu1 }
 0x4f3   : > { %v2330_v27 = vld [vmem:[%s3117_s6] ss:$0 sm:$0xff] }
 0x551   : > { %v1634_v33 = vpop.trf.xlu0 }
 0x569   : > { %v1666_v38 = vpop.trf.xlu1 }
 0x56d   : > { %v1698_v41 = vpop.trf.xlu0  ;;  %v1730_v42 = vpop.trf.xlu1 }
 0x56e   : > { %v1746_v43 = vcombine.low %v1634_v33, %v1698_v41  ;;  %v1747_v44 = vcombine.high %v1634_v33, %v1698_v41  ;;  %v1762_v45 = vcombine.low %v1666_v38, %v1730_v42  ;;  %v1763_v46 = vcombine.high %v1666_v38, %v1730_v42  ;;  %v2014_v38 = vld [vmem:[%s3120_s9 + $0x18] sm:$0xff]  ;;  %v2113_v42 = vld [vmem:[%s3122_s11 + $0x70] sm:$0xff] }
 0x56f   : > { %v2114_v41 = vld [vmem:[%s3122_s11 + $0x78] sm:$0xff] }
 0x570   : > { %v1754_v48 = vrot.slane %v1746_v43, %v1753_v40  ;;  %v1761_v49 = vrot.slane %v1747_v44, %v1753_v40  ;;  %v1770_v50 = vrot.slane %v1762_v45, %v1753_v40  ;;  %v1777_v51 = vrot.slane %v1763_v46, %v1753_v40  ;;  %2481 = vmatpush3.msra.mxu0 %v2114_v41  ;;  %v2112_v43 = vld [vmem:[%s3122_s11 + $0x68] sm:$0xff]  ;;  %v2111_v44 = vld [vmem:[%s3122_s11 + $0x60] sm:$0xff] }
 0x571   : > { %2482 = vmatprep.subr.mxu0 %v2681_v1 }
 0x572   : > { %v1778_v52 = vcombine.low %v1754_v48, %v1770_v50  ;;  %v1779_v53 = vcombine.high %v1754_v48, %v1770_v50  ;;  %v1794_v54 = vcombine.low %v1761_v49, %v1777_v51  ;;  %v1795_v55 = vcombine.high %v1761_v49, %v1777_v51  ;;  %2483 = vmatpush3.msra.mxu0 %v2113_v42  ;;  %v2332_v49 = vld [vmem:[%s3118_s7] ss:$0 sm:$0xff] }
 0x573   : > { %2484 = vmatprep.subr.mxu0 %v2681_v1  ;;  %v2333_v51 = vld [vmem:[%s3119_s8] ss:$0 sm:$0xff] }
 0x574   : > { %v1786_v58 = vrot.slane %v1778_v52, %v1785_v47  ;;  %v1793_v59 = vrot.slane %v1779_v53, %v1785_v47  ;;  %v1802_v60 = vrot.slane %v1794_v54, %v1785_v47  ;;  %v1809_v61 = vrot.slane %v1795_v55, %v1785_v47  ;;  %2485 = vmatpush3.msra.mxu0 %v2112_v43  ;;  %v2110_v54 = vld [vmem:[%s3122_s11 + $0x58] sm:$0xff]  ;;  %v2109_v55 = vld [vmem:[%s3122_s11 + $0x50] sm:$0xff] }
 0x575   : > { %2486 = vmatprep.subr.mxu0 %v2681_v1 }
 0x576   : > { %v1814_v62 = vcombine.low %v1786_v58, %v1793_v59  ;;  %v2328_v63 = vcombine.high %v1786_v58, %v1793_v59  ;;  %v1830_v0 = vcombine.low %v1802_v60, %v1809_v61  ;;  %v2329_v2 = vcombine.high %v1802_v60, %v1809_v61  ;;  %2487 = vmatpush3.msra.mxu0 %v2111_v44  ;;  %v2106_v58 = vld [vmem:[%s3122_s11 + $0x38] sm:$0xff]  ;;  %v2105_v59 = vld [vmem:[%s3122_s11 + $0x30] sm:$0xff]  ;;  %v2104_v60 = vld [vmem:[%s3122_s11 + $0x28] sm:$0xff] }
 0x577   : > { %2488 = vmatprep.subr.mxu0 %v2681_v1  ;;  %v2103_v61 = vld [vmem:[%s3122_s11 + $0x20] sm:$0xff] }
 0x578   : > { %v1821_v4 = vrot.slane %v1814_v62, %v1753_v40  ;;  %v1829_v6 = vrot.slane %v2328_v63, %v1753_v40  ;;  %v1837_v7 = vrot.slane %v1830_v0, %v1753_v40  ;;  %v1845_v8 = vrot.slane %v2329_v2, %v1753_v40  ;;  %v2011_v40 = vld [vmem:[%s3120_s9] sm:$0xff]  ;;  %2489 = vmatpush3.msra.mxu0 %v2110_v54  ;;  %v2102_v62 = vld [vmem:[%s3122_s11 + $0x18] sm:$0xff]  ;;  %v2101_v63 = vld [vmem:[%s3122_s11 + $0x10] sm:$0xff] }
 0x579   : > { %2490 = vmatprep.subr.mxu0 %v2681_v1  ;;  %v2100_v0 = vld [vmem:[%s3122_s11 + $0x8] sm:$0xff]  ;;  %v2099_v2 = vld [vmem:[%s3122_s11] sm:$0xff] }
 0x57a   : > { %v1847_v9 = vcombine.high %v1821_v4, %v1829_v6  ;;  %v1863_v10 = vcombine.high %v1837_v7, %v1845_v8  ;;  %v1846_v11 = vcombine.low %v1821_v4, %v1829_v6  ;;  %v1862_v12 = vcombine.low %v1837_v7, %v1845_v8  ;;  %2491 = vmatpush3.msra.mxu0 %v2109_v55 }
 0x57b   : > { %2492 = vmatprep.subr.mxu0 %v2681_v1 }
 0x57c   : > { %v1861_v13 = vrot.slane %v1847_v9, %v1785_v47  ;;  %v1877_v14 = vrot.slane %v1863_v10, %v1785_v47  ;;  %v1854_v15 = vrot.slane %v1846_v11, %v1785_v47  ;;  %v1870_v16 = vrot.slane %v1862_v12, %v1785_v47  ;;  %2493 = vmatpush3.msra.mxu0 %v2108_v56 }
 0x57d   : > { %2494 = vmatprep.subr.mxu0 %v2681_v1 }
 0x57e   : > { %v1880_v17 = vcombine.low %v1861_v13, %v1877_v14  ;;  %v1879_v18 = vcombine.high %v1854_v15, %v1870_v16  ;;  %v1878_v19 = vcombine.low %v1854_v15, %v1870_v16  ;;  %v1881_v20 = vcombine.high %v1861_v13, %v1877_v14  ;;  %2495 = vmatpush3.msra.mxu0 %v2107_v57  ;;  %v2336_v13 = vld [vmem:[%s3123_s12] ss:$0 sm:$0xff] }
 0x57f   : > { %2496 = vmatprep.subr.mxu0 %v2681_v1 }
 0x580   : > { %1887 = vrot.lane.b32.xlu1 %v1880_v17, %s2689_s16  ;;  %1883 = vrot.lane.b32.xlu0 %v1879_v18, %s2690_s25  ;;  %s2310_s16 = sshll.u32 %s497_s22, 3 }
 0x581   : > { %2497 = vmatpush3.msra.mxu0 %v2106_v58  ;;  %s499_s27 = scalar_lea.vmem [#allocation4], %s2310_s16 }
 0x582   : > { %2498 = vmatprep.subr.mxu0 %v2681_v1  ;;  %s2235_s20 = sshll.u32 %s499_s27, 4  ;;  %s2236_s20 = int_to_ptr.vmem [resolvable:$true] %s2235_s20 }
 0x583   : > { %2499 = vmatpush3.msra.mxu0 %v2105_v59  ;;  %s2603_s25 = scalar_lea.vmem %s2236_s20, 128 }
 0x584   : > { %1891 = vrot.lane.b32.xlu1 %v1881_v20, %s2691_s29  ;;  %2500 = vmatprep.subr.mxu0 %v2681_v1  ;;  %p2604_p12 = scmp.ne.s32.totalorder %s2236_s20, %s2603_s25  ;;  %s2692_s29 = smov [#allocation4]  }
 0x585   : > { %2501 = vmatpush3.msra.mxu0 %v2104_v60  ;;  %s2607_s17 = sshll.u32 %s2692_s29, 4  ;;  %s2608_s17 = int_to_ptr.vmem [resolvable:$false] %s2607_s17 }
 0x586   : > { %2502 = vmatprep.subr.mxu0 %v2681_v1  ;;  %p2605_p13 = pnand %p2604_p12, %p2813_p4  ;;  %s2609_s21 = scalar_lea.vmem %s2608_s17, 256 }
 0x587   : > { %2503 = vmatpush3.msra.mxu0 %v2103_v61  ;;  %p2610_p1 = scmp.lt.s32.totalorder %s2236_s20, %s2608_s17  ;;  %p2611_p2 = scmp.lt.s32.totalorder %s2609_s21, %s2603_s25 }
 0x588   : > { %2504 = vmatprep.subr.mxu0 %v2681_v1  ;;  %p2606_p0 = pneg %p2605_p13 }
 0x589   : > { %2505 = vmatpush3.msra.mxu0 %v2102_v62  ;;  %p2612_p3 = por %p2611_p2, %p2610_p1 }
 0x58a   : > { %2506 = vmatprep.subr.mxu0 %v2681_v1 }
 0x58b   : > { %2507 = vmatpush3.msra.mxu0 %v2101_v63  ;;  %p2613_p5 = pnand %p2612_p3, %p2606_p0 }
 0x58c   : > { %2508 = vmatprep.subr.mxu0 %v2681_v1 }
 0x58d   : > { %2509 = vmatpush3.msra.mxu0 %v2100_v0 }
 0x58e   : > { %2510 = vmatprep.subr.mxu0 %v2681_v1 }
 0x58f   : > { %2511 = vmatpush3.msra.mxu0 %v2099_v2 }
 0x5f2   : > { %v1888_v21 = vpop.permute.xlu1 %1887  ;;  %v1884_v22 = vpop.permute.xlu0 %1883 }
 0x5f3   : > { %v1894_v23 = vsel %vm853_vm2, %v1878_v19, %v1884_v22 }
 0x5f4   : > { %v1896_v25 = vsel %vm1895_vm3, %v1894_v23, %v1888_v21 }
 0x5f6   : > { %v1892_v24 = vpop.permute.xlu1 %1891 }
 0x5f7   : > { %v1898_v26 = vsel %vm1897_vm4, %v1896_v25, %v1892_v24 }
 0x5f8   : > { %2467 = vmatmul.mubr.msk.f32.vlgmr.msra.gmra.mxu1 %vm531_vm1, %v1898_v26 }
 0x5f9   : > { %2477 = vmatprep.mubr.msk.f32.mxu1 %vm2682_vm0, %v2681_v1  ;;  %2470 = vmatpush3.msra.mxu1 %v2014_v38 }
 0x5fa   : > { %2471 = vmatprep.subr.mxu1 %v2681_v1 }
 0x5fb   : > { %2472 = vmatpush3.msra.mxu1 %v2013_v39 }
 0x5fc   : > { %2473 = vmatprep.subr.mxu1 %v2681_v1 }
 0x6b8   : > { %v1978_v28 = vpop.f32.mrf.mxu1 }
 0x6b9   : > { %v1979_v29 = vadd.f32 %v2330_v27, %v1978_v28  ;;  %v2337_v27 = vld [vmem:[%s3124_s13] ss:$0 sm:$0xff] }
 0x6ba   : > { %v2468_v30 = vpop.f32.mrf.mxu1 }
 0x6bb   : > { %v1982_v31 = vadd.f32 %v1979_v29, %v2853_v5  ;;  %v2012_v5 = vld [vmem:[%s3120_s9 + $0x8] sm:$0xff]  ;;  %v2338_v29 = vld [vmem:[%s3125_s14] ss:$0 sm:$0xff] }
 0x6bc   : > { %2474 = vmatpush3.msra.mxu1 %v2012_v5 }
 0x6bd   : > { %v1983_v32 = vsel %vm531_vm1, %v1982_v31, 0.0  ;;  %2475 = vmatprep.subr.mxu1 %v2681_v1 }
 0x6be   : > { %1984 = vadd.xlane.f32.xlu1 %v1983_v32  ;;  %2476 = vmatpush3.msra.mxu1 %v2011_v40 }
 0x747   : > { %v1985_v33 = vpop.xlane.xlu1 %1984 }
 0x748   : > { %v1987_v34 = vmul.f32 0.03125, %v1985_v33 }
 0x74a   : > { %v1988_v35 = vsub.f32 %v1982_v31, %v1987_v34 }
 0x74c   : > { %v1989_v36 = vmul.f32 %v1988_v35, %v1988_v35 }
 0x74e   : > { %v1990_v37 = vsel %vm531_vm1, %v1989_v36, 0.0 }
 0x74f   : > { %1991 = vadd.xlane.f32.xlu0 %v1990_v37 }
 0x7d8   : > { %v1992_v45 = vpop.xlane.xlu0 %1991 }
 0x7d9   : > { %v1993_v46 = vmul.f32 0.03125, %v1992_v45 }
 0x7db   : > { %v1994_v47 = vadd.f32 1e-05, %v1993_v46 }
 0x7dd   : > { %2597 = vrsqrt.f32 %v1994_v47 }
 0x7ea   : > { %v2598_v48 = vpop.eup %2597 }
 0x7eb   : > { %v1996_v50 = vmul.f32 %v2598_v48, %v1988_v35 }
 0x7ed   : > { %v2003_v52 = vmul.f32 %v2332_v49, %v1996_v50 }
 0x7ef   : > { %v2010_v53 = vadd.f32 %v2333_v51, %v2003_v52 }
 0x7f1   : > { %2478 = vmatmul.mubr.msk.f32.vlgmr.msra.gmra.mxu1 %vm531_vm1, %v2010_v53 }
 0x8b1   : > { %v2090_v4 = vpop.f32.mrf.mxu1 }
 0x8b2   : > { %v2091_v6 = vadd.f32 %v2334_v3, %v2090_v4 }
 0x8b3   : > { %v2479_v7 = vpop.f32.mrf.mxu1 }
 0x8b4   : > { %v2095_v8 = vmul.f32 0.70710677, %v2091_v6  ;;  %v2094_v10 = vmul.f32 0.5, %v2091_v6 }
 0x8b6   : > { %2599 = verf.f32 %v2095_v8 }
 0x8c3   : > { %v2600_v9 = vpop.eup %2599 }
 0x8c4   : > { %v2097_v11 = vadd.f32 1.0, %v2600_v9 }
 0x8c6   : > { %v2098_v12 = vmul.f32 %v2097_v11, %v2094_v10 }
 0x8c8   : > { %2513 = vmatmul.mubr.f32.vlgmr.msra.gmra.mxu0 %v2098_v12 }
 0x988   : > { %v2187_v1 = vpop.f32.mrf.mxu0 }
 0x989   : > { %v2188_v14 = vadd.f32 %v2336_v13, %v2187_v1 }
 0x98a   : > { %v2514_v15 = vpop.f32.mrf.mxu0 }
 0x98b   : > { %v2191_v16 = vadd.f32 %v2188_v14, %v2188_v14 }
 0x98d   : > { %v2192_v17 = vsel %vm531_vm1, %v2191_v16, 0.0 }
 0x98e   : > { %2193 = vadd.xlane.f32.xlu0 %v2192_v17 }
 0xa17   : > { %v2194_v18 = vpop.xlane.xlu0 %2193 }
 0xa18   : > { %v2195_v19 = vmul.f32 0.03125, %v2194_v18 }
 0xa1a   : > { %v2196_v20 = vsub.f32 %v2191_v16, %v2195_v19 }
 0xa1c   : > { %v2197_v21 = vmul.f32 %v2196_v20, %v2196_v20 }
 0xa1e   : > { %v2198_v22 = vsel %vm531_vm1, %v2197_v21, 0.0 }
 0xa1f   : > { %2199 = vadd.xlane.f32.xlu1 %v2198_v22 }
 0xaa8   : > { %v2200_v23 = vpop.xlane.xlu1 %2199 }
 0xaa9   : > { %v2201_v24 = vmul.f32 0.03125, %v2200_v23 }
 0xaab   : > { %v2202_v25 = vadd.f32 1e-05, %v2201_v24 }
 0xaad   : > { %2601 = vrsqrt.f32 %v2202_v25 }
 0xaba   : > { %v2602_v26 = vpop.eup %2601 }
 0xabb   : > { %v2204_v28 = vmul.f32 %v2602_v26, %v2196_v20 }
 0xabd   : > { %v2211_v30 = vmul.f32 %v2337_v27, %v2204_v28 }
 0xabf   : > { %v2218_v31 = vadd.f32 %v2338_v29, %v2211_v30 }
 0xac1   : > { %2219 = vst.msk [vmem:[%s499_s27] sm:$0xff] %vm531_vm1, %v2218_v31 }
 0xac2   : > { %2616 = shalt.err (!%p2613_p5)
}
 0xac3   : > { %s2617_s0 = scalar_lea.hbm %s2233_s2, 128  ;;  %s2621_s16 = scalar_lea.hbm %s3126_s15, 256 }
 0xac4   : > { %p2618_p6 = scmp.ne.s32.totalorder %s2233_s2, %s2617_s0  ;;  %p2622_p10 = scmp.lt.s32.totalorder %s2233_s2, %s3126_s15 }
 0xac5   : > { %p2623_p11 = scmp.lt.s32.totalorder %s2621_s16, %s2617_s0 }
 0xac6   : > { %p2619_p7 = pnand %p2618_p6, %p2813_p4 }
 0xac7   : > { %p2624_p12 = por %p2623_p11, %p2622_p10 }
 0xac8   : > { %p2620_p9 = pneg %p2619_p7 }
 0xaca   : > { %p2625_p13 = pnand %p2624_p12, %p2620_p9 }
 0xacc   : > { %2628 = shalt.err (!%p2625_p13)
}
 0xacd   : > { %2515 = dma.vmem_to_hbm [thread:$0]  (%p2813_p4), %s2236_s20, 128, %s2233_s2, %s2221_s3  }
 0xace PF: > { %p2521_p0 = scmp.ge.s32.totalorder %s2679_s23, 2  ;;  %s2247_s27 = sand.u32 1, %s2659_s18  }
 0xacf   : > { %s2248_s25 = scalar_lea.sflag [#allocation5], %s2247_s27 }
 0xad0   : > { %p2518_p1 = pnand %p2521_p0, %p2820_p8 }
 0xad2   : > { %p2519_p2 = pneg %p2518_p1 }
 0xad4   : > { %2654 = dma.done.wait (%p2519_p2), %s2248_s25, 128  }
 0xad5   : > { %2656 = vsyncadd (%p2519_p2), %s2248_s25, 4294967168  ;;  %s28_s23 = sadd.s32 1, %s2679_s23   ;;  %s3144_s29 = sld [smem:[#allocation7_spill]] }
 0xad6   : > { %p25_p3 = scmp.ge.s32.totalorder %s28_s23, 4   ;;  %s3145_s20 = sld [smem:[#allocation10_spill]] }
 0xad7   : > { %s3146_s21 = sld [smem:[#allocation8_spill]]  ;;  %s3148_s18 = smov %s2663_s19 }
 0xad8   : > { %s3147_s22 = sld [smem:[#allocation9_spill]]  ;;  %27 = sbr.rel (!%p25_p3) target bundleno = 9 (0x9), region = 120 }
 0xadb   : > { %s3149_s19 = smov %s3144_s29 }
 0xadd   :  { %2253 = vsyncpa [#allocation5], 1 }
 0xade   :  { %2255 = vsyncpa [#allocation5 + $0x1], 1 }

</bundles_post_ra>
